<compile_context>
chip_gen: v6e
topology: v6e:2x2x1
jax: 0.10.0
libtpu: 0.0.40
codegen_flags: <defaults>
</compile_context>

<pallas_src>
import functools

import jax
import jax.numpy as jnp
from jax.experimental import pallas as pl
from jax.experimental.pallas import tpu as pltpu


# ----------------------------------------------------------------------------
# Pallas kernel: fused 1x1-conv (matmul) + bias + ReLU, spatial-in-lanes layout
# ----------------------------------------------------------------------------
def conv1x1_relu_kernel(x_ref, w_ref, b_ref, o_ref):
    # x_ref: (1, Cin, T)   -- lanes carry flattened spatial positions
    # w_ref: (Cout, Cin)   -- resident weight (same block every grid step)
    # b_ref: (Cout, 1)
    # o_ref: (1, Cout, T)  -- lane-dense output store
    x = x_ref[0]                                                    # (Cin, T)
    y = jnp.dot(w_ref[...], x, preferred_element_type=jnp.float32)  # (Cout, T)
    y = y + b_ref[...]                                              # bias bcast over lanes
    o_ref[0] = jnp.maximum(y, 0.0).astype(o_ref.dtype)


def _choose_tile_hw(hw, cin, cout, itemsize=4, budget_bytes=24 << 20):
    """Pick (tile, hw_padded).

    Largest lane tile keeping ~2x double-buffered x/out blocks under budget.
    If H*W must be split, prefer a 128-aligned divisor of H*W so no pad/slice
    copies are needed; otherwise fall back to a 128-aligned tile + zero pad.
    """
    per_lane = 2 * (cin + cout) * itemsize       # double-buffered x and out
    t_max = max(budget_bytes // per_lane, 128)
    if hw <= t_max:
        return int(hw), int(hw)                  # whole spatial slab fits

    t_max = (int(min(t_max, 8192)) // 128) * 128
    t_max = max(t_max, 128)

    # Prefer an exact 128-multiple divisor of hw (no padding / slicing), but
    # keep the tile large enough to amortize per-grid-step overhead.
    t = t_max
    floor = min(1024, t_max)
    while t >= floor:
        if hw % t == 0:
            return int(t), int(hw)
        t -= 128

    tile = t_max
    hw_pad = ((hw + tile - 1) // tile) * tile
    return int(tile), int(hw_pad)


def conv1x1_relu_nchw(x3, w, b):
    """x3: (B, Cin, HW), w: (Cout, Cin), b: (Cout,) -> (B, Cout, HW)."""
    B, Cin, HW = x3.shape
    Cout = w.shape[0]
    itemsize = x3.dtype.itemsize

    tile, hw_pad = _choose_tile_hw(HW, Cin, Cout, itemsize)
    if hw_pad != HW:
        x3 = jnp.pad(x3, ((0, 0), (0, 0), (0, hw_pad - HW)))

    b2d = b.reshape(Cout, 1)

    # Conservative scoped-VMEM request (fits v5e/v6e/v7x physical VMEM).
    need = 2 * tile * (Cin + Cout) * itemsize + Cin * Cout * itemsize + Cout * itemsize
    vmem_limit = int(min(max(3 * need, 32 << 20), 48 << 20))

    cost = pl.CostEstimate(
        flops=2 * B * hw_pad * Cin * Cout,
        transcendentals=0,
        bytes_accessed=itemsize * (B * hw_pad * (Cin + Cout) + Cin * Cout + Cout),
    )

    y3 = pl.pallas_call(
        conv1x1_relu_kernel,
        out_shape=jax.ShapeDtypeStruct((B, Cout, hw_pad), x3.dtype),
        grid_spec=pltpu.PrefetchScalarGridSpec(
            num_scalar_prefetch=0,
            grid=(B, hw_pad // tile),
            in_specs=[
                pl.BlockSpec((1, Cin, tile), lambda b, t: (b, 0, t)),
                pl.BlockSpec((Cout, Cin), lambda b, t: (0, 0)),
                pl.BlockSpec((Cout, 1), lambda b, t: (0, 0)),
            ],
            out_specs=pl.BlockSpec((1, Cout, tile), lambda b, t: (b, 0, t)),
        ),
        compiler_params=pltpu.CompilerParams(
            dimension_semantics=("parallel", "parallel"),
            vmem_limit_bytes=vmem_limit,
        ),
        cost_estimate=cost,
    )(x3, w, b2d)

    if hw_pad != HW:
        y3 = y3[:, :, :HW]
    return y3


# ----------------------------------------------------------------------------
# Parameter init (deterministic, mirrors ICNR structure)
# ----------------------------------------------------------------------------
def icnr_weight(key, n_channels, scale):
    """ICNR: each group of scale^2 output channels shares the same 1x1 filter.

    Returns the conv weight as a (Cout, Cin) matrix (W @ x orientation).
    """
    cin = n_channels
    cout = n_channels * scale ** 2
    std = jnp.sqrt(2.0 / cin)  # kaiming_normal_-style std, fan_in = cin
    base = jax.random.normal(key, (n_channels, cin), dtype=jnp.float32) * std
    # Repeat each base filter scale^2 times along the output-channel axis so
    # that channels [c*s^2 : (c+1)*s^2) are identical (checkerboard-free init).
    w_out_in = jnp.repeat(base, scale ** 2, axis=0)  # (Cout, Cin)
    assert w_out_in.shape == (cout, cin)
    return w_out_in


def conv_bias(key, n_channels, scale):
    cin = n_channels
    cout = n_channels * scale ** 2
    bound = 1.0 / jnp.sqrt(cin)
    return jax.random.uniform(
        key, (cout,), dtype=jnp.float32, minval=-bound, maxval=bound
    )


# ----------------------------------------------------------------------------
# Full module forward
# ----------------------------------------------------------------------------
@functools.partial(jax.jit, static_argnames=("scale",))
def pixel_shuffle_forward(x_nchw, w, b, *, scale):
    B, C, H, W = x_nchw.shape
    s = scale

    # Native NCHW: only a free reshape to flatten the spatial axis into lanes.
    x3 = x_nchw.reshape(B, C, H * W)

    # Fused 1x1-conv + bias + ReLU; output is already (B, C*s^2, H*W) in NCHW.
    y3 = conv1x1_relu_nchw(x3, w, b)

    # Pixel shuffle: (B, C*s^2, H, W) -> (B, C, H*s, W*s)
    # out[b, c, h*s+i, w*s+j] = y[b, c*s^2 + i*s + j, h, w]
    y = y3.reshape(B, C, s, s, H, W)
    y = jnp.transpose(y, (0, 1, 4, 2, 5, 3))  # (B, C, H, s, W, s)
    return y.reshape(B, C, H * s, W * s)


if __name__ == "__main__":
    key = jax.random.PRNGKey(0)
    k_x, k_w, k_b = jax.random.split(key, 3)

    B, C, H, W = 2, 4, 16, 16
    scale = 2

    x = jax.random.normal(k_x, (B, C, H, W), dtype=jnp.float32)
    w = icnr_weight(k_w, C, scale)       # (C*scale^2, C)
    b = conv_bias(k_b, C, scale)         # (C*scale^2,)

    out = pixel_shuffle_forward(x, w, b, scale=scale)
    out = jax.block_until_ready(out)

    # Sanity: output shape (B, C, H*scale, W*scale) and ReLU non-negativity.
    assert out.shape == (B, C, H * scale, W * scale), out.shape
    assert bool(jnp.all(out >= 0.0))

    # Cross-check against a pure-JAX reference of the same math.
    ref = jnp.maximum(
        jnp.einsum("oc,bchw->bohw", w, x) + b[None, :, None, None], 0.0
    )
    ref = ref.reshape(B, C, scale, scale, H, W).transpose(0, 1, 4, 2, 5, 3)
    ref = ref.reshape(B, C, H * scale, W * scale)
    assert jnp.allclose(out, ref, atol=1e-5, rtol=1e-5)

    print("KERNEL_OK")
</pallas_src>

<mosaic_0001>
module attributes {stable_mosaic.version = 11 : i64} {
  func.func @conv1x1_relu_kernel(%arg0: i32, %arg1: i32, %arg2: memref<1x4x256xf32, #tpu.memory_space<vmem>>, %arg3: memref<16x4xf32, #tpu.memory_space<vmem>>, %arg4: memref<16x1xf32, #tpu.memory_space<vmem>>, %arg5: memref<1x16x256xf32, #tpu.memory_space<vmem>>) attributes {dimension_semantics = [#tpu.dimension_semantics<parallel>, #tpu.dimension_semantics<parallel>], iteration_bounds = array<i64: 2, 1>, scalar_prefetch = 0 : i64, scratch_operands = 0 : i64, tpu.core_type = #tpu.core_type<tc>, window_params = [{transform_indices = @transform_0, window_bounds = array<i64: 1, 4, 256>}, {pipeline_mode = #tpu.pipeline_mode<synchronous>, transform_indices = @transform_1, window_bounds = array<i64: 16, 4>}, {pipeline_mode = #tpu.pipeline_mode<synchronous>, transform_indices = @transform_2, window_bounds = array<i64: 16, 1>}, {transform_indices = @transform_3, window_bounds = array<i64: 1, 16, 256>}]} {
    %c0 = arith.constant 0 : index
    %c0_0 = arith.constant 0 : index
    %c0_1 = arith.constant 0 : index
    %0 = vector.load %arg2[%c0, %c0_0, %c0_1] : memref<1x4x256xf32, #tpu.memory_space<vmem>>, vector<1x4x256xf32>
    %1 = vector.shape_cast %0 : vector<1x4x256xf32> to vector<4x256xf32>
    %c0_2 = arith.constant 0 : index
    %c0_3 = arith.constant 0 : index
    %2 = vector.load %arg3[%c0_2, %c0_3] : memref<16x4xf32, #tpu.memory_space<vmem>>, vector<16x4xf32>
    %cst = arith.constant dense<0.000000e+00> : vector<16x256xf32>
    %3 = tpu.matmul %2, %1, %cst {dimension_numbers = #tpu.dot_dimension_numbers<[1], [0], [0], [1], [0, 0, 1, 1], [], []>} : vector<16x4xf32>, vector<4x256xf32>, vector<16x256xf32> -> vector<16x256xf32>
    %c0_4 = arith.constant 0 : index
    %c0_5 = arith.constant 0 : index
    %4 = vector.load %arg4[%c0_4, %c0_5] : memref<16x1xf32, #tpu.memory_space<vmem>>, vector<16x1xf32>
    %5 = vector.broadcast %4 : vector<16x1xf32> to vector<16x256xf32>
    %6 = arith.addf %3, %5 : vector<16x256xf32>
    %cst_6 = arith.constant 0.000000e+00 : f32
    %7 = vector.broadcast %cst_6 : f32 to vector<16x256xf32>
    %8 = arith.maximumf %6, %7 : vector<16x256xf32>
    %c0_7 = arith.constant 0 : index
    %c0_8 = arith.constant 0 : index
    %c0_9 = arith.constant 0 : index
    %9 = vector.load %arg5[%c0_7, %c0_8, %c0_9] : memref<1x16x256xf32, #tpu.memory_space<vmem>>, vector<1x16x256xf32>
    %10 = vector.shape_cast %9 : vector<1x16x256xf32> to vector<16x256xf32>
    %11 = vector.shape_cast %8 : vector<16x256xf32> to vector<1x16x256xf32>
    tpu.vector_store %arg5[%c0_7, %c0_8, %c0_9], %11 {strides = array<i32>} : memref<1x16x256xf32, #tpu.memory_space<vmem>>, vector<1x16x256xf32>,
    return
  }
  func.func @transform_0(%arg0: i32, %arg1: i32) -> (i32, i32, i32) {
    %c0_i32 = arith.constant 0 : i32
    %c0_i32_0 = arith.constant 0 : i32
    return %arg0, %c0_i32, %arg1 : i32, i32, i32
  }
  func.func @transform_1(%arg0: i32, %arg1: i32) -> (i32, i32) {
    %c0_i32 = arith.constant 0 : i32
    %c0_i32_0 = arith.constant 0 : i32
    %c0_i32_1 = arith.constant 0 : i32
    return %c0_i32, %c0_i32_0 : i32, i32
  }
  func.func @transform_2(%arg0: i32, %arg1: i32) -> (i32, i32) {
    %c0_i32 = arith.constant 0 : i32
    %c0_i32_0 = arith.constant 0 : i32
    %c0_i32_1 = arith.constant 0 : i32
    return %c0_i32, %c0_i32_0 : i32, i32
  }
  func.func @transform_3(%arg0: i32, %arg1: i32) -> (i32, i32, i32) {
    %c0_i32 = arith.constant 0 : i32
    %c0_i32_0 = arith.constant 0 : i32
    return %arg0, %c0_i32, %arg1 : i32, i32, i32
  }
}

</mosaic_0001>

<bundles_post_ra>
// kernel: pixel_shuffle_forward.1
= control target key start
LH: loop header
LB: loop body
LE: loop exit
PB: predicated region body
PF: predicated region fallthrough
CT: control target
= control target key end

     0   :  { %s504_s12 = smov 0   ;;  %s506_s13 = smov 0   ;;  %s549_s0 = inlined_call_operand.vmem [shape: f32[2,4,256], index: 0, kind: input, shape index: {}]   ;;  %s550_s1 = inlined_call_operand.vmem [shape: f32[16,4], index: 1, kind: input, shape index: {}]   ;;  %s551_s2 = inlined_call_operand.vmem [shape: f32[16,1], index: 2, kind: input, shape index: {}]   ;;  %s552_s3 = inlined_call_operand.vmem [shape: f32[2,16,256], index: 3, kind: output, shape index: {}]  }
   0x1   :  { %s508_s14 = smov 0  }
   0x2 LB: > { %s25_s15 = sadd.s32 1, %s476_s13  ;;  %p415_p0 = scmp.ge.s32.totalorder %s480_s14, 1  ;;  %s480_s14 = sphi %s508_s14, %s13_s14   ;;  %s476_s13 = sphi %s506_s13, %s554_s13   ;;  %s472_s12 = sphi %s504_s12, %s553_s12  }
   0x3   : > { %p27_p1 = scmp.ge.s32.totalorder %s25_s15, 2  ;;  %p158_p2 = scmp.lt.s32.totalorder %s480_s14, 3 }
   0x5   : > { %s556_s15 = smov (%p27_p1, %s25_s15), 0  ;;  %p159_p3 = pnand %p415_p0, %p158_p2 }
   0x6   : > { %p191_p4 = scmp.lt.s32.totalorder (!%p159_p3), %s472_s12, 1 }
   0x7   : > { %162 = sbr.rel (%p159_p3) target bundleno = 221 (0xdd), region = 32 }
   0xc   : > { %v482_v0 = vmov 0.0   ;;  %v213_v1 = vld [vmem:[%s551_s2] sm:$0xff]  ;;  %s558_s12 = smov (!%p191_p4, %s472_s12), 1  ;;  %v483_v2 = vmov 0   ;;  %v214_v3 = vld [vmem:[%s551_s2 + $0x8] sm:$0xff]  ;;  %vm234_vm0 = vcmask 1043456  }
   0xd   : > { %303 = vmatprep.mubr.f32.mxu0 %v482_v0  ;;  %309 = vmatprep.mubr.f32.mxu1 %v482_v0  ;;  %s426_s18 = sshll.u32 %s558_s12, 3  ;;  %v211_v6 = vld [vmem:[%s550_s1] sm:$0xff]  ;;  %vm227_vm1 = vcmask 31744   ;;  %v212_v7 = vld [vmem:[%s550_s1 + $0x8] sm:$0xff]  ;;  %s427_s28 = sshll.u32 %s558_s12, 5 }
   0xe   : > { %456 = vset.pattern.permute.xlu0 %v483_v2  ;;  %s198_s23 = scalar_lea.vmem %s549_s0, %s426_s18  ;;  %s208_s4 = scalar_lea.vmem %s552_s3, %s427_s28 }
   0xf   : > { %217 = vperm.xlu0 %456, %v213_v1   ;;  %v210_v4 = vld [vmem:[%s198_s23] sm:$0xff] }
  0x10   : > { %v226_v5 = vcombine.high %v210_v4, %v210_v4 }
  0x12   : > { %420 = vmatprep.subr.msk.mxu0 %vm234_vm0, %v226_v5  ;;  %428 = vmatprep.subr.msk.mxu1 %vm234_vm0, %v226_v5 }
  0x13   : > { %222 = vperm.xlu0 %456, %v214_v3   ;;  %421 = vmatpush1.msk.msra.mxu0 %vm234_vm0, %v210_v4 }
  0x14   : > { %429 = vmatpush1.msk.msra.mxu1 %vm234_vm0, %v210_v4  ;;  %422 = vmatmul.mubr.msk.f32.vlgmr.msra.gmra.mxu0 %vm227_vm1, %v211_v6 }
  0x15   : > { %423 = vmatmul.mubr.msk.f32.vlgmr.msra.gmra.mxu1 %vm227_vm1, %v212_v7 }
  0x8a   : > { %v218_v8 = vpop.permute.xlu0 %217 }
  0x8e   : > { %v223_v9 = vpop.permute.xlu0 %222 }
  0xd4   : > { %v305_v10 = vpop.f32.mrf.mxu0 }
  0xd5   : > { %v311_v11 = vpop.f32.mrf.mxu1  ;;  %v306_v12 = vadd.f32 %v305_v10, %v218_v8 }
  0xd6   : > { %v312_v13 = vadd.f32 %v311_v11, %v223_v9  ;;  %v307_v14 = vpop.f32.mrf.mxu0 }
  0xd7   : > { %v313_v15 = vpop.f32.mrf.mxu1  ;;  %v316_v16 = vmax.f32 %v306_v12, 0.0  ;;  %v308_v18 = vadd.f32 %v307_v14, %v218_v8 }
  0xd8   : > { %v318_v17 = vmax.f32 %v312_v13, 0.0  ;;  %v314_v19 = vadd.f32 %v313_v15, %v223_v9 }
  0xd9   : > { %320 = vst [vmem:[%s208_s4] sm:$0xff] %v316_v16  ;;  %v317_v20 = vmax.f32 %v308_v18, 0.0 }
  0xda   : > { %322 = vst [vmem:[%s208_s4 + $0x10] sm:$0xff] %v318_v17  ;;  %v319_v21 = vmax.f32 %v314_v19, 0.0 }
  0xdb   : > { %321 = vst [vmem:[%s208_s4 + $0x8] sm:$0xff] %v317_v20 }
  0xdc   : > { %323 = vst [vmem:[%s208_s4 + $0x18] sm:$0xff] %v319_v21 }
  0xdd PF: > { %s13_s14 = sadd.s32 1, %s480_s14   ;;  %s553_s12 = smov %s476_s13 }
  0xde   : > { %p10_p5 = scmp.ge.s32.totalorder %s13_s14, 4   ;;  %s554_s13 = smov %s556_s15 }
  0xe0   :  { %12 = sbr.rel (!%p10_p5) target bundleno = 2 (0x2), region = 62 }

</bundles_post_ra>
